<compile_context>
chip_gen: v6e
topology: v6e:2x2x1
jax: 0.10.0
libtpu: 0.0.40
codegen_flags: <defaults>
</compile_context>

<pallas_src>
import math
import functools

import jax
import jax.numpy as jnp
from jax.experimental import pallas as pl
from jax.experimental.pallas import tpu as pltpu


def _encoder_layer_kernel(x_ref, mask_ref,
                          wq_ref, bq_ref, wk_ref, bk_ref, wv_ref, bv_ref,
                          wo_ref, bo_ref,
                          g1_ref, be1_ref, g2_ref, be2_ref,
                          w1_ref, b1_ref, w2_ref, b2_ref,
                          o_ref, *, num_heads: int, eps: float):
    x = x_ref[...].astype(jnp.float32)            # (S, D)
    S, D = x.shape
    dk = D // num_heads
    inv_sqrt_dk = 1.0 / math.sqrt(dk)

    def layer_norm(v, gamma, beta):
        mean = jnp.mean(v, axis=-1, keepdims=True)
        diff = v - mean
        # torch.std is unbiased (ddof=1); std**2 + eps as in the PyTorch module.
        var = jnp.sum(diff * diff, axis=-1, keepdims=True) * (1.0 / (D - 1))
        return gamma * diff * jax.lax.rsqrt(var + eps) + beta

    # ---- sublayer 0: pre-norm + multi-head self-attention + residual ----
    h1 = layer_norm(x, g1_ref[...], be1_ref[...])

    q = jnp.dot(h1, wq_ref[...], preferred_element_type=jnp.float32) + bq_ref[...]
    k = jnp.dot(h1, wk_ref[...], preferred_element_type=jnp.float32) + bk_ref[...]
    v = jnp.dot(h1, wv_ref[...], preferred_element_type=jnp.float32) + bv_ref[...]

    masked_out = mask_ref[...] == 0               # (S, S) bool, True -> -1e9
    neg_big = jnp.float32(-1e9)

    head_outs = []
    for hi in range(num_heads):                   # static unrolled loop over heads
        lo, hi_ = hi * dk, (hi + 1) * dk
        qh = q[:, lo:hi_]                         # (S, dk)
        kh = k[:, lo:hi_]
        vh = v[:, lo:hi_]
        s = jnp.dot(qh, kh.T, preferred_element_type=jnp.float32) * inv_sqrt_dk
        s = jnp.where(masked_out, neg_big, s)
        s = s - jnp.max(s, axis=-1, keepdims=True)
        p = jnp.exp(s)
        p = p / jnp.sum(p, axis=-1, keepdims=True)
        head_outs.append(jnp.dot(p, vh, preferred_element_type=jnp.float32))
    attn = jnp.concatenate(head_outs, axis=-1)    # (S, D)
    attn = jnp.dot(attn, wo_ref[...], preferred_element_type=jnp.float32) + bo_ref[...]
    x1 = x + attn                                 # residual (dropout = identity in eval)

    # ---- sublayer 1: pre-norm + position-wise feed-forward + residual ----
    h2 = layer_norm(x1, g2_ref[...], be2_ref[...])
    f = jnp.dot(h2, w1_ref[...], preferred_element_type=jnp.float32) + b1_ref[...]
    f = jnp.maximum(f, 0.0)
    f = jnp.dot(f, w2_ref[...], preferred_element_type=jnp.float32) + b2_ref[...]

    o_ref[...] = (x1 + f).astype(o_ref.dtype)


def encoder_layer(x, mask, params, *, num_heads: int, eps: float = 1e-6):
    """x: (B, S, D) f32; mask: (B, S, S) int32 (1=attend, 0=masked)."""
    B, S, D = x.shape
    weight_order = ["wq", "bq", "wk", "bk", "wv", "bv", "wo", "bo",
                    "g1", "be1", "g2", "be2", "w1", "b1", "w2", "b2"]
    weights = [params[name] for name in weight_order]

    def replicated(a):
        zeros = (0,) * a.ndim
        return pl.BlockSpec(a.shape, lambda b: zeros)   # same full block every step

    kernel = functools.partial(_encoder_layer_kernel, num_heads=num_heads, eps=eps)

    return pl.pallas_call(
        kernel,
        out_shape=jax.ShapeDtypeStruct((B, S, D), x.dtype),
        grid=(B,),
        in_specs=[
            pl.BlockSpec((None, S, D), lambda b: (b, 0, 0)),   # x: one batch row, squeezed
            pl.BlockSpec((None, S, S), lambda b: (b, 0, 0)),   # mask: one batch row
        ] + [replicated(a) for a in weights],
        out_specs=pl.BlockSpec((None, S, D), lambda b: (b, 0, 0)),
        compiler_params=pltpu.CompilerParams(
            dimension_semantics=("parallel",),   # batch rows independent -> megacore on v7x
        ),
    )(x, mask, *weights)


# ---------------------------- pure-JAX reference ----------------------------
def encoder_layer_ref(x, mask, p, num_heads, eps=1e-6):
    def ln(v, g, b):
        mean = v.mean(-1, keepdims=True)
        var = ((v - mean) ** 2).sum(-1, keepdims=True) / (v.shape[-1] - 1)
        return g * (v - mean) / jnp.sqrt(var + eps) + b

    B, S, D = x.shape
    dk = D // num_heads
    h1 = ln(x, p["g1"], p["be1"])
    q = h1 @ p["wq"] + p["bq"]
    k = h1 @ p["wk"] + p["bk"]
    v = h1 @ p["wv"] + p["bv"]
    q = q.reshape(B, S, num_heads, dk).transpose(0, 2, 1, 3)
    k = k.reshape(B, S, num_heads, dk).transpose(0, 2, 1, 3)
    v = v.reshape(B, S, num_heads, dk).transpose(0, 2, 1, 3)
    scores = jnp.einsum("bhqd,bhkd->bhqk", q, k) / math.sqrt(dk)
    scores = jnp.where(mask[:, None, :, :] == 0, -1e9, scores)
    probs = jax.nn.softmax(scores, axis=-1)
    attn = jnp.einsum("bhqk,bhkd->bhqd", probs, v).transpose(0, 2, 1, 3).reshape(B, S, D)
    attn = attn @ p["wo"] + p["bo"]
    x1 = x + attn
    h2 = ln(x1, p["g2"], p["be2"])
    f = jnp.maximum(h2 @ p["w1"] + p["b1"], 0.0)
    f = f @ p["w2"] + p["b2"]
    return x1 + f


if __name__ == "__main__":
    # Small shapes consistent with the module: batch=2, seq=8, d_model=32,
    # 4 heads, d_ff=64.
    B, S, D, H, FF = 2, 8, 32, 4, 64
    EPS = 1e-6

    key = jax.random.PRNGKey(0)
    ks = jax.random.split(key, 16)

    def w(k, shape, scale=0.1):
        return (scale * jax.random.normal(k, shape)).astype(jnp.float32)

    x = jax.random.normal(ks[0], (B, S, D), dtype=jnp.float32)

    # Weights stored as (in, out) so the kernel computes x @ W + b (equivalent
    # to PyTorch nn.Linear with weight.T).
    params = dict(
        wq=w(ks[1], (D, D)), bq=w(ks[2], (1, D)),
        wk=w(ks[3], (D, D)), bk=w(ks[4], (1, D)),
        wv=w(ks[5], (D, D)), bv=w(ks[6], (1, D)),
        wo=w(ks[7], (D, D)), bo=w(ks[8], (1, D)),
        g1=(1.0 + w(ks[9], (1, D))), be1=w(ks[10], (1, D)),
        g2=(1.0 + w(ks[11], (1, D))), be2=w(ks[12], (1, D)),
        w1=w(ks[13], (D, FF)), b1=w(ks[14], (1, FF)),
        w2=w(ks[15], (FF, D)), b2=jnp.zeros((1, D), jnp.float32),
    )

    # Attention mask: 1 = attend, 0 = masked. Mask the last two key positions
    # of batch 1 to exercise the masked_fill path.
    mask = jnp.ones((B, S, S), dtype=jnp.int32)
    mask = mask.at[1, :, S - 2:].set(0)

    out = encoder_layer(x, mask, params, num_heads=H, eps=EPS)
    out = jax.block_until_ready(out)

    ref = encoder_layer_ref(x, mask, params, num_heads=H, eps=EPS)
    assert out.shape == (B, S, D)
    assert jnp.allclose(out, ref, atol=2e-4, rtol=2e-4), (
        "mismatch vs reference: max abs err = "
        f"{float(jnp.max(jnp.abs(out - ref)))}"
    )

    print("KERNEL_OK")
</pallas_src>

<mosaic_0001>
module attributes {stable_mosaic.version = 11 : i64} {
  func.func @_encoder_layer_kernel(%arg0: i32, %arg1: memref<1x8x32xf32, #tpu.memory_space<vmem>>, %arg2: memref<1x8x8xi32, #tpu.memory_space<vmem>>, %arg3: memref<32x32xf32, #tpu.memory_space<vmem>>, %arg4: memref<1x32xf32, #tpu.memory_space<vmem>>, %arg5: memref<32x32xf32, #tpu.memory_space<vmem>>, %arg6: memref<1x32xf32, #tpu.memory_space<vmem>>, %arg7: memref<32x32xf32, #tpu.memory_space<vmem>>, %arg8: memref<1x32xf32, #tpu.memory_space<vmem>>, %arg9: memref<32x32xf32, #tpu.memory_space<vmem>>, %arg10: memref<1x32xf32, #tpu.memory_space<vmem>>, %arg11: memref<1x32xf32, #tpu.memory_space<vmem>>, %arg12: memref<1x32xf32, #tpu.memory_space<vmem>>, %arg13: memref<1x32xf32, #tpu.memory_space<vmem>>, %arg14: memref<1x32xf32, #tpu.memory_space<vmem>>, %arg15: memref<32x64xf32, #tpu.memory_space<vmem>>, %arg16: memref<1x64xf32, #tpu.memory_space<vmem>>, %arg17: memref<64x32xf32, #tpu.memory_space<vmem>>, %arg18: memref<1x32xf32, #tpu.memory_space<vmem>>, %arg19: memref<1x8x32xf32, #tpu.memory_space<vmem>>) attributes {dimension_semantics = [#tpu.dimension_semantics<parallel>], iteration_bounds = array<i64: 2>, scalar_prefetch = 0 : i64, scratch_operands = 0 : i64, tpu.core_type = #tpu.core_type<tc>, window_params = [{transform_indices = @transform_0, window_bounds = array<i64: 1, 8, 32>}, {transform_indices = @transform_1, window_bounds = array<i64: 1, 8, 8>}, {pipeline_mode = #tpu.pipeline_mode<synchronous>, transform_indices = @transform_2, window_bounds = array<i64: 32, 32>}, {pipeline_mode = #tpu.pipeline_mode<synchronous>, transform_indices = @transform_3, window_bounds = array<i64: 1, 32>}, {pipeline_mode = #tpu.pipeline_mode<synchronous>, transform_indices = @transform_4, window_bounds = array<i64: 32, 32>}, {pipeline_mode = #tpu.pipeline_mode<synchronous>, transform_indices = @transform_5, window_bounds = array<i64: 1, 32>}, {pipeline_mode = #tpu.pipeline_mode<synchronous>, transform_indices = @transform_6, window_bounds = array<i64: 32, 32>}, {pipeline_mode = #tpu.pipeline_mode<synchronous>, transform_indices = @transform_7, window_bounds = array<i64: 1, 32>}, {pipeline_mode = #tpu.pipeline_mode<synchronous>, transform_indices = @transform_8, window_bounds = array<i64: 32, 32>}, {pipeline_mode = #tpu.pipeline_mode<synchronous>, transform_indices = @transform_9, window_bounds = array<i64: 1, 32>}, {pipeline_mode = #tpu.pipeline_mode<synchronous>, transform_indices = @transform_10, window_bounds = array<i64: 1, 32>}, {pipeline_mode = #tpu.pipeline_mode<synchronous>, transform_indices = @transform_11, window_bounds = array<i64: 1, 32>}, {pipeline_mode = #tpu.pipeline_mode<synchronous>, transform_indices = @transform_12, window_bounds = array<i64: 1, 32>}, {pipeline_mode = #tpu.pipeline_mode<synchronous>, transform_indices = @transform_13, window_bounds = array<i64: 1, 32>}, {pipeline_mode = #tpu.pipeline_mode<synchronous>, transform_indices = @transform_14, window_bounds = array<i64: 32, 64>}, {pipeline_mode = #tpu.pipeline_mode<synchronous>, transform_indices = @transform_15, window_bounds = array<i64: 1, 64>}, {pipeline_mode = #tpu.pipeline_mode<synchronous>, transform_indices = @transform_16, window_bounds = array<i64: 64, 32>}, {pipeline_mode = #tpu.pipeline_mode<synchronous>, transform_indices = @transform_17, window_bounds = array<i64: 1, 32>}, {transform_indices = @transform_18, window_bounds = array<i64: 1, 8, 32>}]} {
    %c0 = arith.constant 0 : index
    %c0_0 = arith.constant 0 : index
    %c0_1 = arith.constant 0 : index
    %0 = vector.load %arg1[%c0, %c0_0, %c0_1] : memref<1x8x32xf32, #tpu.memory_space<vmem>>, vector<1x8x32xf32>
    %1 = vector.shape_cast %0 : vector<1x8x32xf32> to vector<8x32xf32>
    %c0_2 = arith.constant 0 : index
    %c0_3 = arith.constant 0 : index
    %2 = vector.load %arg11[%c0_2, %c0_3] : memref<1x32xf32, #tpu.memory_space<vmem>>, vector<1x32xf32>
    %c0_4 = arith.constant 0 : index
    %c0_5 = arith.constant 0 : index
    %3 = vector.load %arg12[%c0_4, %c0_5] : memref<1x32xf32, #tpu.memory_space<vmem>>, vector<1x32xf32>
    %cst = arith.constant dense<0.000000e+00> : vector<8xf32>
    %4 = vector.multi_reduction <add>, %1, %cst [1] : vector<8x32xf32> to vector<8xf32>
    %5 = vector.shape_cast %4 : vector<8xf32> to vector<8x1xf32>
    %cst_6 = arith.constant 3.200000e+01 : f32
    %6 = vector.broadcast %cst_6 : f32 to vector<8x1xf32>
    %7 = arith.divf %5, %6 : vector<8x1xf32>
    %8 = vector.broadcast %7 : vector<8x1xf32> to vector<8x32xf32>
    %9 = arith.subf %1, %8 : vector<8x32xf32>
    %10 = arith.mulf %9, %9 : vector<8x32xf32>
    %cst_7 = arith.constant dense<0.000000e+00> : vector<8xf32>
    %11 = vector.multi_reduction <add>, %10, %cst_7 [1] : vector<8x32xf32> to vector<8xf32>
    %12 = vector.shape_cast %11 : vector<8xf32> to vector<8x1xf32>
    %cst_8 = arith.constant 0.0322580636 : f32
    %13 = vector.broadcast %cst_8 : f32 to vector<8x1xf32>
    %14 = arith.mulf %12, %13 : vector<8x1xf32>
    %15 = vector.broadcast %2 : vector<1x32xf32> to vector<8x32xf32>
    %16 = arith.mulf %15, %9 : vector<8x32xf32>
    %cst_9 = arith.constant 9.99999997E-7 : f32
    %17 = vector.broadcast %cst_9 : f32 to vector<8x1xf32>
    %18 = arith.addf %14, %17 : vector<8x1xf32>
    %19 = math.rsqrt %18 : vector<8x1xf32>
    %20 = vector.broadcast %19 : vector<8x1xf32> to vector<8x32xf32>
    %21 = arith.mulf %16, %20 : vector<8x32xf32>
    %22 = vector.broadcast %3 : vector<1x32xf32> to vector<8x32xf32>
    %23 = arith.addf %21, %22 : vector<8x32xf32>
    %c0_10 = arith.constant 0 : index
    %c0_11 = arith.constant 0 : index
    %24 = vector.load %arg3[%c0_10, %c0_11] : memref<32x32xf32, #tpu.memory_space<vmem>>, vector<32x32xf32>
    %cst_12 = arith.constant dense<0.000000e+00> : vector<8x32xf32>
    %25 = tpu.matmul %23, %24, %cst_12 {dimension_numbers = #tpu.dot_dimension_numbers<[1], [0], [0], [1], [0, 0, 1, 1], [], []>} : vector<8x32xf32>, vector<32x32xf32>, vector<8x32xf32> -> vector<8x32xf32>
    %c0_13 = arith.constant 0 : index
    %c0_14 = arith.constant 0 : index
    %26 = vector.load %arg4[%c0_13, %c0_14] : memref<1x32xf32, #tpu.memory_space<vmem>>, vector<1x32xf32>
    %27 = vector.broadcast %26 : vector<1x32xf32> to vector<8x32xf32>
    %28 = arith.addf %25, %27 : vector<8x32xf32>
    %c0_15 = arith.constant 0 : index
    %c0_16 = arith.constant 0 : index
    %29 = vector.load %arg5[%c0_15, %c0_16] : memref<32x32xf32, #tpu.memory_space<vmem>>, vector<32x32xf32>
    %cst_17 = arith.constant dense<0.000000e+00> : vector<8x32xf32>
    %30 = tpu.matmul %23, %29, %cst_17 {dimension_numbers = #tpu.dot_dimension_numbers<[1], [0], [0], [1], [0, 0, 1, 1], [], []>} : vector<8x32xf32>, vector<32x32xf32>, vector<8x32xf32> -> vector<8x32xf32>
    %c0_18 = arith.constant 0 : index
    %c0_19 = arith.constant 0 : index
    %31 = vector.load %arg6[%c0_18, %c0_19] : memref<1x32xf32, #tpu.memory_space<vmem>>, vector<1x32xf32>
    %32 = vector.broadcast %31 : vector<1x32xf32> to vector<8x32xf32>
    %33 = arith.addf %30, %32 : vector<8x32xf32>
    %c0_20 = arith.constant 0 : index
    %c0_21 = arith.constant 0 : index
    %34 = vector.load %arg7[%c0_20, %c0_21] : memref<32x32xf32, #tpu.memory_space<vmem>>, vector<32x32xf32>
    %cst_22 = arith.constant dense<0.000000e+00> : vector<8x32xf32>
    %35 = tpu.matmul %23, %34, %cst_22 {dimension_numbers = #tpu.dot_dimension_numbers<[1], [0], [0], [1], [0, 0, 1, 1], [], []>} : vector<8x32xf32>, vector<32x32xf32>, vector<8x32xf32> -> vector<8x32xf32>
    %c0_23 = arith.constant 0 : index
    %c0_24 = arith.constant 0 : index
    %36 = vector.load %arg8[%c0_23, %c0_24] : memref<1x32xf32, #tpu.memory_space<vmem>>, vector<1x32xf32>
    %37 = vector.broadcast %36 : vector<1x32xf32> to vector<8x32xf32>
    %38 = arith.addf %35, %37 : vector<8x32xf32>
    %c0_25 = arith.constant 0 : index
    %c0_26 = arith.constant 0 : index
    %c0_27 = arith.constant 0 : index
    %39 = vector.load %arg2[%c0_25, %c0_26, %c0_27] : memref<1x8x8xi32, #tpu.memory_space<vmem>>, vector<1x8x8xi32>
    %40 = vector.shape_cast %39 : vector<1x8x8xi32> to vector<8x8xi32>
    %c0_i32 = arith.constant 0 : i32
    %41 = vector.broadcast %c0_i32 : i32 to vector<8x8xi32>
    %42 = arith.cmpi eq, %40, %41 : vector<8x8xi32>
    %43 = vector.extract_strided_slice %28 {offsets = [0, 0], sizes = [8, 8], strides = [1, 1]} : vector<8x32xf32> to vector<8x8xf32>
    %44 = vector.extract_strided_slice %33 {offsets = [0, 0], sizes = [8, 8], strides = [1, 1]} : vector<8x32xf32> to vector<8x8xf32>
    %45 = vector.extract_strided_slice %38 {offsets = [0, 0], sizes = [8, 8], strides = [1, 1]} : vector<8x32xf32> to vector<8x8xf32>
    %46 = tpu.transpose %44, [1, 0] : vector<8x8xf32> -> vector<8x8xf32>
    %cst_28 = arith.constant dense<0.000000e+00> : vector<8x8xf32>
    %47 = tpu.matmul %43, %46, %cst_28 {dimension_numbers = #tpu.dot_dimension_numbers<[1], [0], [0], [1], [0, 0, 1, 1], [], []>} : vector<8x8xf32>, vector<8x8xf32>, vector<8x8xf32> -> vector<8x8xf32>
    %cst_29 = arith.constant 0.353553385 : f32
    %48 = vector.broadcast %cst_29 : f32 to vector<8x8xf32>
    %49 = arith.mulf %47, %48 : vector<8x8xf32>
    %cst_30 = arith.constant -1.000000e+09 : f32
    %50 = vector.broadcast %cst_30 : f32 to vector<8x8xf32>
    %51 = arith.select %42, %50, %49 : vector<8x8xi1>, vector<8x8xf32>
    %cst_31 = arith.constant dense<0xFF800000> : vector<8xf32>
    %52 = vector.multi_reduction <maximumf>, %51, %cst_31 [1] : vector<8x8xf32> to vector<8xf32>
    %53 = vector.shape_cast %52 : vector<8xf32> to vector<8x1xf32>
    %54 = vector.broadcast %53 : vector<8x1xf32> to vector<8x8xf32>
    %55 = arith.subf %51, %54 : vector<8x8xf32>
    %56 = math.exp %55 : vector<8x8xf32>
    %cst_32 = arith.constant dense<0.000000e+00> : vector<8xf32>
    %57 = vector.multi_reduction <add>, %56, %cst_32 [1] : vector<8x8xf32> to vector<8xf32>
    %58 = vector.shape_cast %57 : vector<8xf32> to vector<8x1xf32>
    %59 = vector.broadcast %58 : vector<8x1xf32> to vector<8x8xf32>
    %60 = arith.divf %56, %59 : vector<8x8xf32>
    %cst_33 = arith.constant dense<0.000000e+00> : vector<8x8xf32>
    %61 = tpu.matmul %60, %45, %cst_33 {dimension_numbers = #tpu.dot_dimension_numbers<[1], [0], [0], [1], [0, 0, 1, 1], [], []>} : vector<8x8xf32>, vector<8x8xf32>, vector<8x8xf32> -> vector<8x8xf32>
    %62 = vector.extract_strided_slice %28 {offsets = [0, 8], sizes = [8, 8], strides = [1, 1]} : vector<8x32xf32> to vector<8x8xf32>
    %63 = vector.extract_strided_slice %33 {offsets = [0, 8], sizes = [8, 8], strides = [1, 1]} : vector<8x32xf32> to vector<8x8xf32>
    %64 = vector.extract_strided_slice %38 {offsets = [0, 8], sizes = [8, 8], strides = [1, 1]} : vector<8x32xf32> to vector<8x8xf32>
    %65 = tpu.transpose %63, [1, 0] : vector<8x8xf32> -> vector<8x8xf32>
    %cst_34 = arith.constant dense<0.000000e+00> : vector<8x8xf32>
    %66 = tpu.matmul %62, %65, %cst_34 {dimension_numbers = #tpu.dot_dimension_numbers<[1], [0], [0], [1], [0, 0, 1, 1], [], []>} : vector<8x8xf32>, vector<8x8xf32>, vector<8x8xf32> -> vector<8x8xf32>
    %cst_35 = arith.constant 0.353553385 : f32
    %67 = vector.broadcast %cst_35 : f32 to vector<8x8xf32>
    %68 = arith.mulf %66, %67 : vector<8x8xf32>
    %cst_36 = arith.constant -1.000000e+09 : f32
    %69 = vector.broadcast %cst_36 : f32 to vector<8x8xf32>
    %70 = arith.select %42, %69, %68 : vector<8x8xi1>, vector<8x8xf32>
    %cst_37 = arith.constant dense<0xFF800000> : vector<8xf32>
    %71 = vector.multi_reduction <maximumf>, %70, %cst_37 [1] : vector<8x8xf32> to vector<8xf32>
    %72 = vector.shape_cast %71 : vector<8xf32> to vector<8x1xf32>
    %73 = vector.broadcast %72 : vector<8x1xf32> to vector<8x8xf32>
    %74 = arith.subf %70, %73 : vector<8x8xf32>
    %75 = math.exp %74 : vector<8x8xf32>
    %cst_38 = arith.constant dense<0.000000e+00> : vector<8xf32>
    %76 = vector.multi_reduction <add>, %75, %cst_38 [1] : vector<8x8xf32> to vector<8xf32>
    %77 = vector.shape_cast %76 : vector<8xf32> to vector<8x1xf32>
    %78 = vector.broadcast %77 : vector<8x1xf32> to vector<8x8xf32>
    %79 = arith.divf %75, %78 : vector<8x8xf32>
    %cst_39 = arith.constant dense<0.000000e+00> : vector<8x8xf32>
    %80 = tpu.matmul %79, %64, %cst_39 {dimension_numbers = #tpu.dot_dimension_numbers<[1], [0], [0], [1], [0, 0, 1, 1], [], []>} : vector<8x8xf32>, vector<8x8xf32>, vector<8x8xf32> -> vector<8x8xf32>
    %81 = vector.extract_strided_slice %28 {offsets = [0, 16], sizes = [8, 8], strides = [1, 1]} : vector<8x32xf32> to vector<8x8xf32>
    %82 = vector.extract_strided_slice %33 {offsets = [0, 16], sizes = [8, 8], strides = [1, 1]} : vector<8x32xf32> to vector<8x8xf32>
    %83 = vector.extract_strided_slice %38 {offsets = [0, 16], sizes = [8, 8], strides = [1, 1]} : vector<8x32xf32> to vector<8x8xf32>
    %84 = tpu.transpose %82, [1, 0] : vector<8x8xf32> -> vector<8x8xf32>
    %cst_40 = arith.constant dense<0.000000e+00> : vector<8x8xf32>
    %85 = tpu.matmul %81, %84, %cst_40 {dimension_numbers = #tpu.dot_dimension_numbers<[1], [0], [0], [1], [0, 0, 1, 1], [], []>} : vector<8x8xf32>, vector<8x8xf32>, vector<8x8xf32> -> vector<8x8xf32>
    %cst_41 = arith.constant 0.353553385 : f32
    %86 = vector.broadcast %cst_41 : f32 to vector<8x8xf32>
    %87 = arith.mulf %85, %86 : vector<8x8xf32>
    %cst_42 = arith.constant -1.000000e+09 : f32
    %88 = vector.broadcast %cst_42 : f32 to vector<8x8xf32>
    %89 = arith.select %42, %88, %87 : vector<8x8xi1>, vector<8x8xf32>
    %cst_43 = arith.constant dense<0xFF800000> : vector<8xf32>
    %90 = vector.multi_reduction <maximumf>, %89, %cst_43 [1] : vector<8x8xf32> to vector<8xf32>
    %91 = vector.shape_cast %90 : vector<8xf32> to vector<8x1xf32>
    %92 = vector.broadcast %91 : vector<8x1xf32> to vector<8x8xf32>
    %93 = arith.subf %89, %92 : vector<8x8xf32>
    %94 = math.exp %93 : vector<8x8xf32>
    %cst_44 = arith.constant dense<0.000000e+00> : vector<8xf32>
    %95 = vector.multi_reduction <add>, %94, %cst_44 [1] : vector<8x8xf32> to vector<8xf32>
    %96 = vector.shape_cast %95 : vector<8xf32> to vector<8x1xf32>
    %97 = vector.broadcast %96 : vector<8x1xf32> to vector<8x8xf32>
    %98 = arith.divf %94, %97 : vector<8x8xf32>
    %cst_45 = arith.constant dense<0.000000e+00> : vector<8x8xf32>
    %99 = tpu.matmul %98, %83, %cst_45 {dimension_numbers = #tpu.dot_dimension_numbers<[1], [0], [0], [1], [0, 0, 1, 1], [], []>} : vector<8x8xf32>, vector<8x8xf32>, vector<8x8xf32> -> vector<8x8xf32>
    %100 = vector.extract_strided_slice %28 {offsets = [0, 24], sizes = [8, 8], strides = [1, 1]} : vector<8x32xf32> to vector<8x8xf32>
    %101 = vector.extract_strided_slice %33 {offsets = [0, 24], sizes = [8, 8], strides = [1, 1]} : vector<8x32xf32> to vector<8x8xf32>
    %102 = vector.extract_strided_slice %38 {offsets = [0, 24], sizes = [8, 8], strides = [1, 1]} : vector<8x32xf32> to vector<8x8xf32>
    %103 = tpu.transpose %101, [1, 0] : vector<8x8xf32> -> vector<8x8xf32>
    %cst_46 = arith.constant dense<0.000000e+00> : vector<8x8xf32>
    %104 = tpu.matmul %100, %103, %cst_46 {dimension_numbers = #tpu.dot_dimension_numbers<[1], [0], [0], [1], [0, 0, 1, 1], [], []>} : vector<8x8xf32>, vector<8x8xf32>, vector<8x8xf32> -> vector<8x8xf32>
    %cst_47 = arith.constant 0.353553385 : f32
    %105 = vector.broadcast %cst_47 : f32 to vector<8x8xf32>
    %106 = arith.mulf %104, %105 : vector<8x8xf32>
    %cst_48 = arith.constant -1.000000e+09 : f32
    %107 = vector.broadcast %cst_48 : f32 to vector<8x8xf32>
    %108 = arith.select %42, %107, %106 : vector<8x8xi1>, vector<8x8xf32>
    %cst_49 = arith.constant dense<0xFF800000> : vector<8xf32>
    %109 = vector.multi_reduction <maximumf>, %108, %cst_49 [1] : vector<8x8xf32> to vector<8xf32>
    %110 = vector.shape_cast %109 : vector<8xf32> to vector<8x1xf32>
    %111 = vector.broadcast %110 : vector<8x1xf32> to vector<8x8xf32>
    %112 = arith.subf %108, %111 : vector<8x8xf32>
    %113 = math.exp %112 : vector<8x8xf32>
    %cst_50 = arith.constant dense<0.000000e+00> : vector<8xf32>
    %114 = vector.multi_reduction <add>, %113, %cst_50 [1] : vector<8x8xf32> to vector<8xf32>
    %115 = vector.shape_cast %114 : vector<8xf32> to vector<8x1xf32>
    %116 = vector.broadcast %115 : vector<8x1xf32> to vector<8x8xf32>
    %117 = arith.divf %113, %116 : vector<8x8xf32>
    %cst_51 = arith.constant dense<0.000000e+00> : vector<8x8xf32>
    %118 = tpu.matmul %117, %102, %cst_51 {dimension_numbers = #tpu.dot_dimension_numbers<[1], [0], [0], [1], [0, 0, 1, 1], [], []>} : vector<8x8xf32>, vector<8x8xf32>, vector<8x8xf32> -> vector<8x8xf32>
    %119 = tpu.concatenate %61, %80, %99, %118 in 1 : vector<8x8xf32>, vector<8x8xf32>, vector<8x8xf32>, vector<8x8xf32> -> vector<8x32xf32>
    %c0_52 = arith.constant 0 : index
    %c0_53 = arith.constant 0 : index
    %120 = vector.load %arg9[%c0_52, %c0_53] : memref<32x32xf32, #tpu.memory_space<vmem>>, vector<32x32xf32>
    %cst_54 = arith.constant dense<0.000000e+00> : vector<8x32xf32>
    %121 = tpu.matmul %119, %120, %cst_54 {dimension_numbers = #tpu.dot_dimension_numbers<[1], [0], [0], [1], [0, 0, 1, 1], [], []>} : vector<8x32xf32>, vector<32x32xf32>, vector<8x32xf32> -> vector<8x32xf32>
    %c0_55 = arith.constant 0 : index
    %c0_56 = arith.constant 0 : index
    %122 = vector.load %arg10[%c0_55, %c0_56] : memref<1x32xf32, #tpu.memory_space<vmem>>, vector<1x32xf32>
    %123 = vector.broadcast %122 : vector<1x32xf32> to vector<8x32xf32>
    %124 = arith.addf %121, %123 : vector<8x32xf32>
    %125 = arith.addf %1, %124 : vector<8x32xf32>
    %c0_57 = arith.constant 0 : index
    %c0_58 = arith.constant 0 : index
    %126 = vector.load %arg13[%c0_57, %c0_58] : memref<1x32xf32, #tpu.memory_space<vmem>>, vector<1x32xf32>
    %c0_59 = arith.constant 0 : index
    %c0_60 = arith.constant 0 : index
    %127 = vector.load %arg14[%c0_59, %c0_60] : memref<1x32xf32, #tpu.memory_space<vmem>>, vector<1x32xf32>
    %cst_61 = arith.constant dense<0.000000e+00> : vector<8xf32>
    %128 = vector.multi_reduction <add>, %125, %cst_61 [1] : vector<8x32xf32> to vector<8xf32>
    %129 = vector.shape_cast %128 : vector<8xf32> to vector<8x1xf32>
    %cst_62 = arith.constant 3.200000e+01 : f32
    %130 = vector.broadcast %cst_62 : f32 to vector<8x1xf32>
    %131 = arith.divf %129, %130 : vector<8x1xf32>
    %132 = vector.broadcast %131 : vector<8x1xf32> to vector<8x32xf32>
    %133 = arith.subf %125, %132 : vector<8x32xf32>
    %134 = arith.mulf %133, %133 : vector<8x32xf32>
    %cst_63 = arith.constant dense<0.000000e+00> : vector<8xf32>
    %135 = vector.multi_reduction <add>, %134, %cst_63 [1] : vector<8x32xf32> to vector<8xf32>
    %136 = vector.shape_cast %135 : vector<8xf32> to vector<8x1xf32>
    %cst_64 = arith.constant 0.0322580636 : f32
    %137 = vector.broadcast %cst_64 : f32 to vector<8x1xf32>
    %138 = arith.mulf %136, %137 : vector<8x1xf32>
    %139 = vector.broadcast %126 : vector<1x32xf32> to vector<8x32xf32>
    %140 = arith.mulf %139, %133 : vector<8x32xf32>
    %cst_65 = arith.constant 9.99999997E-7 : f32
    %141 = vector.broadcast %cst_65 : f32 to vector<8x1xf32>
    %142 = arith.addf %138, %141 : vector<8x1xf32>
    %143 = math.rsqrt %142 : vector<8x1xf32>
    %144 = vector.broadcast %143 : vector<8x1xf32> to vector<8x32xf32>
    %145 = arith.mulf %140, %144 : vector<8x32xf32>
    %146 = vector.broadcast %127 : vector<1x32xf32> to vector<8x32xf32>
    %147 = arith.addf %145, %146 : vector<8x32xf32>
    %c0_66 = arith.constant 0 : index
    %c0_67 = arith.constant 0 : index
    %148 = vector.load %arg15[%c0_66, %c0_67] : memref<32x64xf32, #tpu.memory_space<vmem>>, vector<32x64xf32>
    %cst_68 = arith.constant dense<0.000000e+00> : vector<8x64xf32>
    %149 = tpu.matmul %147, %148, %cst_68 {dimension_numbers = #tpu.dot_dimension_numbers<[1], [0], [0], [1], [0, 0, 1, 1], [], []>} : vector<8x32xf32>, vector<32x64xf32>, vector<8x64xf32> -> vector<8x64xf32>
    %c0_69 = arith.constant 0 : index
    %c0_70 = arith.constant 0 : index
    %150 = vector.load %arg16[%c0_69, %c0_70] : memref<1x64xf32, #tpu.memory_space<vmem>>, vector<1x64xf32>
    %151 = vector.broadcast %150 : vector<1x64xf32> to vector<8x64xf32>
    %152 = arith.addf %149, %151 : vector<8x64xf32>
    %cst_71 = arith.constant 0.000000e+00 : f32
    %153 = vector.broadcast %cst_71 : f32 to vector<8x64xf32>
    %154 = arith.maximumf %152, %153 : vector<8x64xf32>
    %c0_72 = arith.constant 0 : index
    %c0_73 = arith.constant 0 : index
    %155 = vector.load %arg17[%c0_72, %c0_73] : memref<64x32xf32, #tpu.memory_space<vmem>>, vector<64x32xf32>
    %cst_74 = arith.constant dense<0.000000e+00> : vector<8x32xf32>
    %156 = tpu.matmul %154, %155, %cst_74 {dimension_numbers = #tpu.dot_dimension_numbers<[1], [0], [0], [1], [0, 0, 1, 1], [], []>} : vector<8x64xf32>, vector<64x32xf32>, vector<8x32xf32> -> vector<8x32xf32>
    %c0_75 = arith.constant 0 : index
    %c0_76 = arith.constant 0 : index
    %157 = vector.load %arg18[%c0_75, %c0_76] : memref<1x32xf32, #tpu.memory_space<vmem>>, vector<1x32xf32>
    %158 = vector.broadcast %157 : vector<1x32xf32> to vector<8x32xf32>
    %159 = arith.addf %156, %158 : vector<8x32xf32>
    %160 = arith.addf %125, %159 : vector<8x32xf32>
    %c0_77 = arith.constant 0 : index
    %c0_78 = arith.constant 0 : index
    %c0_79 = arith.constant 0 : index
    %161 = vector.load %arg19[%c0_77, %c0_78, %c0_79] : memref<1x8x32xf32, #tpu.memory_space<vmem>>, vector<1x8x32xf32>
    %162 = vector.shape_cast %161 : vector<1x8x32xf32> to vector<8x32xf32>
    %163 = vector.shape_cast %160 : vector<8x32xf32> to vector<1x8x32xf32>
    tpu.vector_store %arg19[%c0_77, %c0_78, %c0_79], %163 {strides = array<i32>} : memref<1x8x32xf32, #tpu.memory_space<vmem>>, vector<1x8x32xf32>,
    return
  }
  func.func @transform_0(%arg0: i32) -> (i32, i32, i32) {
    %c0_i32 = arith.constant 0 : i32
    %c0_i32_0 = arith.constant 0 : i32
    %c0_i32_1 = arith.constant 0 : i32
    return %arg0, %c0_i32, %c0_i32_0 : i32, i32, i32
  }
  func.func @transform_1(%arg0: i32) -> (i32, i32, i32) {
    %c0_i32 = arith.constant 0 : i32
    %c0_i32_0 = arith.constant 0 : i32
    %c0_i32_1 = arith.constant 0 : i32
    return %arg0, %c0_i32, %c0_i32_0 : i32, i32, i32
  }
  func.func @transform_2(%arg0: i32) -> (i32, i32) {
    %c0_i32 = arith.constant 0 : i32
    %c0_i32_0 = arith.constant 0 : i32
    %c0_i32_1 = arith.constant 0 : i32
    return %c0_i32, %c0_i32_0 : i32, i32
  }
  func.func @transform_3(%arg0: i32) -> (i32, i32) {
    %c0_i32 = arith.constant 0 : i32
    %c0_i32_0 = arith.constant 0 : i32
    %c0_i32_1 = arith.constant 0 : i32
    return %c0_i32, %c0_i32_0 : i32, i32
  }
  func.func @transform_4(%arg0: i32) -> (i32, i32) {
    %c0_i32 = arith.constant 0 : i32
    %c0_i32_0 = arith.constant 0 : i32
    %c0_i32_1 = arith.constant 0 : i32
    return %c0_i32, %c0_i32_0 : i32, i32
  }
  func.func @transform_5(%arg0: i32) -> (i32, i32) {
    %c0_i32 = arith.constant 0 : i32
    %c0_i32_0 = arith.constant 0 : i32
    %c0_i32_1 = arith.constant 0 : i32
    return %c0_i32, %c0_i32_0 : i32, i32
  }
  func.func @transform_6(%arg0: i32) -> (i32, i32) {
    %c0_i32 = arith.constant 0 : i32
    %c0_i32_0 = arith.constant 0 : i32
    %c0_i32_1 = arith.constant 0 : i32
    return %c0_i32, %c0_i32_0 : i32, i32
  }
  func.func @transform_7(%arg0: i32) -> (i32, i32) {
    %c0_i32 = arith.constant 0 : i32
    %c0_i32_0 = arith.constant 0 : i32
    %c0_i32_1 = arith.constant 0 : i32
    return %c0_i32, %c0_i32_0 : i32, i32
  }
  func.func @transform_8(%arg0: i32) -> (i32, i32) {
    %c0_i32 = arith.constant 0 : i32
    %c0_i32_0 = arith.constant 0 : i32
    %c0_i32_1 = arith.constant 0 : i32
    return %c0_i32, %c0_i32_0 : i32, i32
  }
  func.func @transform_9(%arg0: i32) -> (i32, i32) {
    %c0_i32 = arith.constant 0 : i32
    %c0_i32_0 = arith.constant 0 : i32
    %c0_i32_1 = arith.constant 0 : i32
    return %c0_i32, %c0_i32_0 : i32, i32
  }
  func.func @transform_10(%arg0: i32) -> (i32, i32) {
    %c0_i32 = arith.constant 0 : i32
    %c0_i32_0 = arith.constant 0 : i32
    %c0_i32_1 = arith.constant 0 : i32
    return %c0_i32, %c0_i32_0 : i32, i32
  }
  func.func @transform_11(%arg0: i32) -> (i32, i32) {
    %c0_i32 = arith.constant 0 : i32
    %c0_i32_0 = arith.constant 0 : i32
    %c0_i32_1 = arith.constant 0 : i32
    return %c0_i32, %c0_i32_0 : i32, i32
  }
  func.func @transform_12(%arg0: i32) -> (i32, i32) {
    %c0_i32 = arith.constant 0 : i32
    %c0_i32_0 = arith.constant 0 : i32
    %c0_i32_1 = arith.constant 0 : i32
    return %c0_i32, %c0_i32_0 : i32, i32
  }
  func.func @transform_13(%arg0: i32) -> (i32, i32) {
    %c0_i32 = arith.constant 0 : i32
    %c0_i32_0 = arith.constant 0 : i32
    %c0_i32_1 = arith.constant 0 : i32
    return %c0_i32, %c0_i32_0 : i32, i32
  }
  func.func @transform_14(%arg0: i32) -> (i32, i32) {
    %c0_i32 = arith.constant 0 : i32
    %c0_i32_0 = arith.constant 0 : i32
    %c0_i32_1 = arith.constant 0 : i32
    return %c0_i32, %c0_i32_0 : i32, i32
  }
  func.func @transform_15(%arg0: i32) -> (i32, i32) {
    %c0_i32 = arith.constant 0 : i32
    %c0_i32_0 = arith.constant 0 : i32
    %c0_i32_1 = arith.constant 0 : i32
    return %c0_i32, %c0_i32_0 : i32, i32
  }
  func.func @transform_16(%arg0: i32) -> (i32, i32) {
    %c0_i32 = arith.constant 0 : i32
    %c0_i32_0 = arith.constant 0 : i32
    %c0_i32_1 = arith.constant 0 : i32
    return %c0_i32, %c0_i32_0 : i32, i32
  }
  func.func @transform_17(%arg0: i32) -> (i32, i32) {
    %c0_i32 = arith.constant 0 : i32
    %c0_i32_0 = arith.constant 0 : i32
    %c0_i32_1 = arith.constant 0 : i32
    return %c0_i32, %c0_i32_0 : i32, i32
  }
  func.func @transform_18(%arg0: i32) -> (i32, i32, i32) {
    %c0_i32 = arith.constant 0 : i32
    %c0_i32_0 = arith.constant 0 : i32
    %c0_i32_1 = arith.constant 0 : i32
    return %arg0, %c0_i32, %c0_i32_0 : i32, i32, i32
  }
}

</mosaic_0001>

<bundles_post_ra>
// kernel: tpu_custom_call.1
= control target key start
LH: loop header
LB: loop body
LE: loop exit
PB: predicated region body
PF: predicated region fallthrough
CT: control target
= control target key end

     0   :  { %s3081_s0 = inlined_call_operand.hbm [shape: f32[2,8,32], index: 0, kind: input, shape index: {}]   ;;  %s3082_s1 = inlined_call_operand.hbm [shape: s32[2,8,8], index: 1, kind: input, shape index: {}]   ;;  %s3083_s2 = inlined_call_operand.vmem [shape: f32[32,32], index: 2, kind: input, shape index: {}]   ;;  %s3084_s3 = inlined_call_operand.vmem [shape: f32[1,32], index: 3, kind: input, shape index: {}]   ;;  %s3085_s4 = inlined_call_operand.vmem [shape: f32[32,32], index: 4, kind: input, shape index: {}]   ;;  %s3086_s5 = inlined_call_operand.vmem [shape: f32[1,32], index: 5, kind: input, shape index: {}]   ;;  %s3087_s6 = inlined_call_operand.vmem [shape: f32[32,32], index: 6, kind: input, shape index: {}]   ;;  %s3088_s7 = inlined_call_operand.vmem [shape: f32[1,32], index: 7, kind: input, shape index: {}]   ;;  %s3089_s8 = inlined_call_operand.hbm [shape: f32[32,32], index: 8, kind: input, shape index: {}]   ;;  %s3090_s9 = inlined_call_operand.vmem [shape: f32[1,32], index: 9, kind: input, shape index: {}]   ;;  %s3091_s10 = inlined_call_operand.vmem [shape: f32[1,32], index: 10, kind: input, shape index: {}]   ;;  %s3092_s11 = inlined_call_operand.vmem [shape: f32[1,32], index: 11, kind: input, shape index: {}]   ;;  %s3093_s12 = inlined_call_operand.vmem [shape: f32[1,32], index: 12, kind: input, shape index: {}]   ;;  %s3094_s13 = inlined_call_operand.vmem [shape: f32[1,32], index: 13, kind: input, shape index: {}]   ;;  %s3095_s14 = inlined_call_operand.hbm [shape: f32[32,64], index: 14, kind: input, shape index: {}]   ;;  %s3096_s15 = inlined_call_operand.vmem [shape: f32[1,64], index: 15, kind: input, shape index: {}]   ;;  %s3097_s16 = inlined_call_operand.vmem [shape: f32[64,32], index: 16, kind: input, shape index: {}]   ;;  %s3098_s17 = inlined_call_operand.vmem [shape: f32[1,32], index: 17, kind: input, shape index: {}]   ;;  %s3099_s18 = inlined_call_operand.hbm [shape: f32[2,8,32], index: 18, kind: output, shape index: {}]  }
   0x1   :  { %3116 = sst [smem:[#allocation22_spill]] %s3081_s0 }
   0x2   :  { %3117 = sst [smem:[#allocation23_spill]] %s3082_s1 }
   0x3   :  { %3118 = sst [smem:[#allocation24_spill]] %s3083_s2 }
   0x4   :  { %3119 = sst [smem:[#allocation25_spill]] %s3089_s8 }
   0x5   :  { %3120 = sst [smem:[#allocation26_spill]] %s3093_s12 }
   0x6   :  { %3121 = sst [smem:[#allocation27_spill]] %s3094_s13 }
   0x7   :  { %3122 = sst [smem:[#allocation28_spill]] %s3095_s14 }
   0x8   :  { %3123 = sst [smem:[#allocation29_spill]] %s3096_s15 }
   0x9   :  { %3124 = sst [smem:[#allocation30_spill]] %s3097_s16 }
   0xa   :  { %3125 = sst [smem:[#allocation31_spill]] %s3098_s17 }
   0xb   :  { %3126 = sst [smem:[#allocation32_spill]] %s3099_s18 }
   0xc   :  { %23 = vsyncpa [#allocation3], 0 }
   0xd   :  { %25 = vsyncpa [#allocation3 + $0x1], 0 }
   0xe   :  { %26 = vsyncpa [#allocation6], 0 }
   0xf   :  { %28 = vsyncpa [#allocation6 + $0x1], 0 }
  0x10   :  { %29 = vsyncpa [#allocation9], 0 }
  0x11   :  { %30 = vsyncpa [#allocation4], 0 }
  0x12   :  { %32 = vsyncpa [#allocation4 + $0x1], 0  ;;  %s2644_s27 = smov 0   ;;  %s2646_s28 = smov 0  }
  0x13   :  { %s2648_s29 = smov 0   ;;  %s2650_s30 = smov 0  }
  0x14 LB: > { %3127 = sst [smem:[#allocation16_spill]] %s2520_s27  ;;  %s2665_s0 = sadd.s32 4294967295, %s2532_s30   ;;  %s2532_s30 = sphi %s2650_s30, %s3163_s30   ;;  %s2528_s29 = sphi %s2648_s29, %s3165_s29   ;;  %s2524_s28 = sphi %s2646_s28, %s3167_s28   ;;  %s2520_s27 = sphi %s2644_s27, %s3166_s27  }
  0x15   : > { %3128 = sst [smem:[#allocation17_spill]] %s2528_s29  ;;  %s2035_s19 = sadd.s32 4294967294, %s2532_s30  }
  0x16   : > { %p58_p0 = scmp.ne.s32.totalorder %s2524_s28, %s2520_s27  ;;  %p3105_p1 = scmp.eq.s32.totalorder %s2665_s0, 0 }
  0x17   : > { %p450_p3 = scmp.eq.s32.totalorder %s2035_s19, 1  ;;  %p2036_p5 = scmp.ge.s32.totalorder %s2532_s30, 1 }
  0x18   : > { %p2674_p4 = por %p3105_p1, %p58_p0  ;;  %p457_p7 = scmp.lt.s32.totalorder %s2532_s30, 3 }
  0x19   : > { %p2679_p6 = por %p450_p3, %p58_p0  ;;  %s2534_s22 = smov [#allocation7]  }
  0x1a   : > { %s3129_s1 = scalar_select %p2674_p4, 1, 0 }
  0x1b   : > { %s3130_s20 = scalar_select %p2679_p6, 1, 0 }
  0x1c   : > { %p2684_p8 = pnand %p2036_p5, %p457_p7  ;;  %s487_s2 = sshll.u32 %s2534_s22, 4  ;;  %s488_s2 = int_to_ptr.vmem [resolvable:$true] %s487_s2 }
  0x1d   : > { %3131 = sst [smem:[#allocation18_spill]] %s3130_s20  ;;  %s2535_s24 = smov [#allocation8]  }
  0x1e   : > { %s3132_s21 = scalar_select %p2684_p8, 1, 0 }
  0x1f   : > { %p2260_p9 = pneg %p2684_p8  ;;  %s515_s25 = sshll.u32 %s2535_s24, 4  ;;  %s516_s25 = int_to_ptr.vmem [resolvable:$true] %s515_s25 }
  0x20   : > { %s2359_s26 = scalar_lea.vmem %s488_s2, 512  ;;  %p2367_p5 = scmp.lt.s32.totalorder %s488_s2, %s488_s2 }
  0x21   : > { %p2693_p11 = pnand %p2260_p9, %p3105_p1  ;;  %p2360_p13 = scmp.ne.s32.totalorder %s488_s2, %s2359_s26 }
  0x22   : > { %p2368_p7 = scmp.lt.s32.totalorder %s2359_s26, %s2359_s26 }
  0x23   : > { %p2350_p12 = pneg %p2693_p11 }
  0x24   : > { %p2369_p10 = por %p2368_p7, %p2367_p5 }
  0x25   : > { %p2362_p0 = pnand %p2360_p13, %p2350_p12 }
  0x27   : > { %p2363_p3 = pneg %p2362_p0 }
  0x29   : > { %p2370_p9 = pnand %p2369_p10, %p2363_p3 }
  0x2b   : > { %2373 = shalt.err (!%p2370_p9)
}
  0x2c   : > { %s2536_s19 = smov 128   ;;  %s2537_s22 = smov 8  }
  0x2d   : > { %s3134_s8 = sld [smem:[#allocation25_spill]]  ;;  %s2385_s27 = scalar_lea.vmem %s516_s25, 512 }
  0x2e   : > { %p2386_p1 = scmp.ne.s32.totalorder %s516_s25, %s2385_s27  ;;  %p2393_p2 = scmp.lt.s32.totalorder %s516_s25, %s516_s25 }
  0x2f   : > { %p2394_p6 = scmp.lt.s32.totalorder %s2385_s27, %s2385_s27 }
  0x30   : > { %p2388_p13 = pnand %p2386_p1, %p2350_p12 }
  0x31   : > { %p2395_p5 = por %p2394_p6, %p2393_p2 }
  0x32   : > { %p2389_p0 = pneg %p2388_p13 }
  0x33   : > { %2263 = dma.hbm_to_vmem [thread:$0]  (!%p2693_p11), %s3134_s8, 512, %s488_s2, [#allocation6], %s2536_s19, %s2536_s19, %s2537_s22  }
  0x34   : > { %p2396_p10 = pnand %p2395_p5, %p2389_p0 }
  0x36   : > { %2399 = shalt.err (!%p2396_p10)
}
  0x37   : > { %s3135_s14 = sld [smem:[#allocation28_spill]]  ;;  %s2716_s27 = sadd.s32 1, %s2532_s30  }
  0x38   : > { %3136 = sst [smem:[#allocation19_spill]] %s2716_s27  ;;  %s45_s20 = sadd.s32 1, %s2528_s29 }
  0x39   : > { %s42_s2 = ssub.s32 %s2532_s30, %s2716_s27  ;;  %p52_p1 = scmp.ne.s32.totalorder %s2528_s29, %s2524_s28 }
  0x3a   : > { %p43_p2 = scmp.eq.s32.totalorder %s42_s2, 0  ;;  %p53_p6 = scmp.eq.s32.totalorder %s2532_s30, 0 }
  0x3b   : > { %p3137_p12 = scmp.eq.s32.totalorder %s2665_s0, 1  ;;  %p2280_p7 = scmp.lt.s32.totalorder %s2532_s30, 2 }
  0x3c   : > { %s2732_s23 = scalar_select %p43_p2, %s2528_s29, %s45_s20  }
  0x3d   : > { %2266 = dma.hbm_to_vmem [thread:$0]  (!%p2693_p11), %s3135_s14, 512, %s516_s25, [#allocation9], %s2536_s19, %s2536_s19, %s2537_s22  }
  0x3e   : > { %p2726_p3 = por %p3137_p12, %p52_p1  ;;  %3140 = sst [smem:[#allocation21_spill]] %s2732_s23 }
  0x3f   : > { %p54_p9 = por %p53_p6, %p52_p1  ;;  %s538_s24 = sand.u32 1, %s2528_s29  }
  0x40   : > { %s3138_s18 = scalar_select %p2726_p3, 1, 0 }
  0x41   : > { %s2735_s25 = sshll.u32 %s538_s24, 3  ;;  %s2041_s19 = sshll.u32 %s2532_s30, 7 }
  0x42   : > { %3139 = sst [smem:[#allocation20_spill]] %s3138_s18  ;;  %s542_s2 = scalar_lea.vmem [#allocation2], %s2735_s25 }
  0x43   : > { %s3141_s8 = sld [smem:[#allocation22_spill]]  ;;  %s549_s27 = sshll.u32 %s542_s2, 4  ;;  %s2744_s27 = int_to_ptr.vmem [resolvable:$true] %s549_s27 }
  0x44   : > { %p2746_p11 = pnand %p2280_p7, %p54_p9  ;;  %s3143_s17 = sld [smem:[#allocation23_spill]] }
  0x45   : > { %s556_s22 = sand.u32 1, %s2532_s30   ;;  %s539_s26 = scalar_lea.sflag [#allocation3], %s538_s24 }
  0x46   : > { %p2402_p0 = pneg %p2746_p11 }
  0x49   : > { %s2741_s14 = scalar_lea.hbm %s3141_s8, %s2041_s19  ;;  %s2405_s12 = scalar_lea.hbm %s3141_s8, 256 }
  0x4a   : > { %s2753_s18 = scalar_lea.hbm %s3143_s17, %s2041_s19  ;;  %s2400_s15 = scalar_lea.hbm %s2741_s14, 128 }
  0x4b   : > { %p2401_p13 = scmp.ne.s32.totalorder %s2741_s14, %s2400_s15  ;;  %p2406_p1 = scmp.lt.s32.totalorder %s2741_s14, %s3141_s8 }
  0x4c   : > { %p2407_p2 = scmp.lt.s32.totalorder %s2405_s12, %s2400_s15 }
  0x4d   : > { %p2403_p5 = pnand %p2402_p0, %p2401_p13 }
  0x4e   : > { %p2408_p6 = por %p2407_p2, %p2406_p1 }
  0x4f   : > { %p2404_p10 = pneg %p2403_p5 }
  0x51   : > { %p2409_p12 = pnand %p2408_p6, %p2404_p10 }
  0x53   : > { %2412 = shalt.err (!%p2409_p12)
}
  0x54   : > { %s2413_s23 = scalar_lea.vmem %s2744_s27, 128  ;;  %s2538_s13 = smov [#allocation2]  }
  0x55   : > { %p2414_p7 = scmp.ne.s32.totalorder %s2744_s27, %s2413_s23  ;;  %s2418_s24 = sshll.u32 %s2538_s13, 4  ;;  %s2419_s24 = int_to_ptr.vmem [resolvable:$false] %s2418_s24 }
  0x56   : > { %s2420_s19 = scalar_lea.vmem %s2419_s24, 256  ;;  %p2421_p5 = scmp.lt.s32.totalorder %s2744_s27, %s2419_s24 }
  0x57   : > { %p2416_p9 = pnand %p2414_p7, %p2402_p0  ;;  %p2422_p3 = scmp.lt.s32.totalorder %s2420_s19, %s2413_s23 }
  0x59   : > { %p2417_p13 = pneg %p2416_p9  ;;  %p2423_p4 = por %p2422_p3, %p2421_p5 }
  0x5b   : > { %p2424_p1 = pnand %p2423_p4, %p2417_p13 }
  0x5d   : > { %2427 = shalt.err (!%p2424_p1)
}
  0x5e   : > { %2270 = dma.hbm_to_vmem [thread:$0]  (!%p2746_p11), %s2741_s14, 128, %s2744_s27, %s539_s26  }
  0x5f   : > { %s560_s12 = scalar_lea.vmem [#allocation5], %s2735_s25  ;;  %s557_s16 = scalar_lea.sflag [#allocation6], %s556_s22 }
  0x60   : > { %s567_s15 = sshll.u32 %s560_s12, 4  ;;  %s2428_s2 = scalar_lea.hbm %s2753_s18, 128  ;;  %s568_s15 = int_to_ptr.vmem [resolvable:$true] %s567_s15 }
  0x61   : > { %p2429_p3 = scmp.ne.s32.totalorder %s2753_s18, %s2428_s2  ;;  %s2433_s13 = scalar_lea.hbm %s3143_s17, 256 }
  0x62   : > { %p2434_p2 = scmp.lt.s32.totalorder %s2753_s18, %s3143_s17  ;;  %p2435_p6 = scmp.lt.s32.totalorder %s2433_s13, %s2428_s2 }
  0x63   : > { %p2431_p4 = pnand %p2429_p3, %p2402_p0 }
  0x64   : > { %p2436_p12 = por %p2435_p6, %p2434_p2 }
  0x65   : > { %p2432_p10 = pneg %p2431_p4 }
  0x67   : > { %p2437_p7 = pnand %p2436_p12, %p2432_p10 }
  0x69   : > { %2440 = shalt.err (!%p2437_p7)
}
  0x6a   : > { %s2441_s14 = scalar_lea.vmem %s568_s15, 128  ;;  %s2539_s27 = smov [#allocation5]  }
  0x6b   : > { %p2442_p9 = scmp.ne.s32.totalorder %s568_s15, %s2441_s14  ;;  %s2446_s25 = sshll.u32 %s2539_s27, 4  ;;  %s2447_s25 = int_to_ptr.vmem [resolvable:$false] %s2446_s25 }
  0x6c   : > { %s2448_s22 = scalar_lea.vmem %s2447_s25, 256  ;;  %p2449_p1 = scmp.lt.s32.totalorder %s568_s15, %s2447_s25 }
  0x6d   : > { %p2444_p13 = pnand %p2442_p9, %p2402_p0  ;;  %p2450_p3 = scmp.lt.s32.totalorder %s2448_s22, %s2441_s14 }
  0x6f   : > { %p2445_p5 = pneg %p2444_p13  ;;  %p2451_p4 = por %p2450_p3, %p2449_p1 }
  0x71   : > { %p2452_p8 = pnand %p2451_p4, %p2445_p5 }
  0x73   : > { %2455 = shalt.err (!%p2452_p8)
}
  0x74   : > { %2273 = dma.hbm_to_vmem [thread:$0]  (!%p2746_p11), %s2753_s18, 128, %s568_s15, %s557_s16  }
  0x75   : > { %p3144_p10 = scmp.ne.s32.totalorder %s3132_s21, 0 }
  0x76   : > { %s2804_s26 = sand.u32 (!%p3144_p10), 1, %s2524_s28   ;;  %p3145_p0 = scmp.ne.s32.totalorder (!%p3144_p10), %s3129_s1, 0 }
  0x77   : > { %576 = sbr.rel (%p3144_p10) target bundleno = 2542 (0x9ee), region = 92  ;;  %s2807_s12 = sshll.u32 (!%p3144_p10), %s2804_s26, 3 }
  0x78   : > { %s579_s2 = scalar_lea.sflag (!%p3144_p10), [#allocation3], %s2804_s26  ;;  %s582_s29 = scalar_lea.vmem (!%p3144_p10), [#allocation2], %s2807_s12 }
  0x7c   : > { %2499 = dma.done.wait (%p3145_p0), %s579_s2, 128  }
  0x7d   : > { %2501 = vsyncadd (%p3145_p0), %s579_s2, 4294967168  ;;  %s587_s21 = sand.u32 1, %s2665_s0   ;;  %s591_s20 = scalar_lea.vmem [#allocation5], %s2807_s12 }
  0x7e   : > { %s588_s18 = scalar_lea.sflag [#allocation6], %s587_s21 }
  0x7f   : > { %2503 = dma.done.wait (%p3145_p0), %s588_s18, 128  }
  0x80   : > { %2505 = vsyncadd (%p3145_p0), %s588_s18, 4294967168  ;;  %p3146_p8 = scmp.eq.s32.totalorder %s2665_s0, 0 }
  0x82   : > { %2507 = dma.done.wait (%p3146_p8), [#allocation6], 512   ;;  %p3147_p11 = pmov %p3146_p8 }
  0x83   : > { %p3148_p2 = pmov %p3146_p8 }
  0x84   : > { %2509 = vsyncadd (%p3147_p11), [#allocation6], 4294966784 }
  0x85   : > { %2511 = dma.done.wait (%p3148_p2), [#allocation9], 512   ;;  %p3149_p6 = pmov %p3148_p2 }
  0x86   : > { %vm660_vm0 = vcmask 261120   ;;  %v2829_v0 = vld [vmem:[%s582_s29] sm:$0xff]  ;;  %s3150_s16 = sld [smem:[#allocation24_spill]]  ;;  %v857_v8 = vld [vmem:[%s3087_s6 + $0x18] sm:$0xff]  ;;  %v2540_v9 = vmov 0.0   ;;  %v856_v11 = vld [vmem:[%s3087_s6 + $0x10] sm:$0xff] }
  0x87   : > { %2513 = vsyncadd (%p3149_p6), [#allocation9], 4294966784  ;;  %v661_v1 = vsel %vm660_vm0, %v2829_v0, 0.0  ;;  %2132 = vmatprep.subr.mxu1 %v2540_v9  ;;  %2154 = vmatprep.subr.mxu0 %v2540_v9  ;;  %v855_v13 = vld [vmem:[%s3087_s6 + $0x8] sm:$0xff]  ;;  %v854_v15 = vld [vmem:[%s3087_s6] sm:$0xff]  ;;  %vm2541_vm1 = vmmov 0  }
  0x88   : > { %662 = vadd.xlane.f32.xlu0 %v661_v1  ;;  %2155 = vmatpush3.msra.mxu0 %v857_v8  ;;  %v2050_v19 = vld [vmem:[%s3091_s10] ss:$0 sm:$0xff]  ;;  %v776_v25 = vld [vmem:[%s3085_s4 + $0x18] sm:$0xff]  ;;  %v775_v26 = vld [vmem:[%s3085_s4 + $0x10] sm:$0xff]  ;;  %s2542_s23 = smov 120   ;;  %vm937_vm2 = vcmask 64512  }
  0x89   : > { %2156 = vmatprep.subr.mxu0 %v2540_v9  ;;  %2140 = vmatprep.mubr.msk.f32.mxu1 %vm2541_vm1, %v2540_v9  ;;  %v2051_v22 = vld [vmem:[%s3092_s11] ss:$0 sm:$0xff]  ;;  %v774_v27 = vld [vmem:[%s3085_s4 + $0x8] sm:$0xff]  ;;  %s2543_s27 = smov 112   ;;  %s2544_s25 = smov 104   ;;  %v935_v47 = vld [vmem:[%s591_s20] sm:$0xff] }
  0x8a   : > { %2157 = vmatpush3.msra.mxu0 %v856_v11  ;;  %2162 = vmatprep.mubr.msk.f32.mxu0 %vm2541_vm1, %v2540_v9  ;;  %v773_v28 = vld [vmem:[%s3085_s4] sm:$0xff]  ;;  %vm936_vm3 = vcmp.eq.s32.totalorder %v935_v47, 0  ;;  %s2545_s20 = smov 8   ;;  %s2546_s22 = smov 16   ;;  %vm1615_vm4 = vcmask 130048   ;;  %vm1617_vm5 = vcmask 195584  }
  0x8b   : > { %2158 = vmatprep.subr.mxu0 %v2540_v9  ;;  %v2052_v29 = vld [vmem:[%s3084_s3] ss:$0 sm:$0xff]  ;;  %s2547_s2 = smov 24   ;;  %s3151_s15 = sld [smem:[#allocation30_spill]]  ;;  %vm1833_vm6 = vcmask 523264  }
  0x8c   : > { %v692_v7 = vld [vmem:[%s3150_s16 + $0x18] sm:$0xff]  ;;  %v691_v10 = vld [vmem:[%s3150_s16 + $0x10] sm:$0xff]  ;;  %v690_v12 = vld [vmem:[%s3150_s16 + $0x8] sm:$0xff]  ;;  %2159 = vmatpush3.msra.mxu0 %v855_v13  ;;  %s3152_s29 = sld [smem:[#allocation26_spill]] }
  0x8d   : > { %2133 = vmatpush3.msra.mxu1 %v692_v7  ;;  %v689_v14 = vld [vmem:[%s3150_s16] sm:$0xff]  ;;  %2160 = vmatprep.subr.mxu0 %v2540_v9  ;;  %s3153_s1 = sld [smem:[#allocation27_spill]] }
  0x8e   : > { %2134 = vmatprep.subr.mxu1 %v2540_v9  ;;  %2161 = vmatpush3.msra.mxu0 %v854_v15  ;;  %v2054_v35 = vld [vmem:[%s3086_s5] ss:$0 sm:$0xff]  ;;  %s3156_s18 = sld [smem:[#allocation31_spill]] }
  0x8f   : > { %2135 = vmatpush3.msra.mxu1 %v691_v10  ;;  %2175 = vmatprep.subr.mxu0 %v2540_v9  ;;  %v2056_v39 = vld [vmem:[%s3088_s7] ss:$0 sm:$0xff]  ;;  %s3157_s14 = sld [smem:[#allocation32_spill]] }
  0x90   : > { %2136 = vmatprep.subr.mxu1 %v2540_v9 }
  0x91   : > { %2137 = vmatpush3.msra.mxu1 %v690_v12 }
  0x92   : > { %2138 = vmatprep.subr.mxu1 %v2540_v9 }
  0x93   : > { %2139 = vmatpush3.msra.mxu1 %v689_v14 }
  0x94   : > { %2143 = vmatprep.subr.mxu1 %v2540_v9 }
 0x111   : > { %v663_v2 = vpop.xlane.xlu0 %662 }
 0x112   : > { %v665_v3 = vmul.f32 0.03125, %v663_v2 }
 0x114   : > { %v666_v4 = vsub.f32 %v2829_v0, %v665_v3 }
 0x116   : > { %v667_v5 = vmul.f32 %v666_v4, %v666_v4  ;;  %v678_v20 = vmul.f32 %v2050_v19, %v666_v4 }
 0x118   : > { %v668_v6 = vsel %vm660_vm0, %v667_v5, 0.0 }
 0x119   : > { %669 = vadd.xlane.f32.xlu0 %v668_v6 }
 0x1a2   : > { %v670_v16 = vpop.xlane.xlu0 %669 }
 0x1a3   : > { %v671_v17 = vmul.f32 0.032258064, %v670_v16 }
 0x1a5   : > { %v679_v18 = vadd.f32 1e-06, %v671_v17 }
 0x1a7   : > { %2328 = vrsqrt.f32 %v679_v18 }
 0x1b4   : > { %v2329_v21 = vpop.eup %2328 }
 0x1b5   : > { %v681_v23 = vmul.f32 %v2329_v21, %v678_v20 }
 0x1b7   : > { %v688_v24 = vadd.f32 %v2051_v22, %v681_v23 }
 0x1b9   : > { %2141 = vmatmul.mubr.msk.f32.vlgmr.msra.gmra.mxu1 %vm660_vm0, %v688_v24  ;;  %2163 = vmatmul.mubr.msk.f32.vlgmr.msra.gmra.mxu0 %vm660_vm0, %v688_v24 }
 0x1ba   : > { %2144 = vmatpush3.msra.mxu1 %v776_v25  ;;  %2151 = vmatprep.mubr.msk.f32.mxu1 %vm2541_vm1, %v2540_v9 }
 0x1bb   : > { %2145 = vmatprep.subr.mxu1 %v2540_v9  ;;  %2177 = vmatprep.mubr.msk.f32.mxu0 %vm2541_vm1, %v2540_v9 }
 0x1bc   : > { %2146 = vmatpush3.msra.mxu1 %v775_v26 }
 0x1bd   : > { %2147 = vmatprep.subr.mxu1 %v2540_v9 }
 0x1be   : > { %2148 = vmatpush3.msra.mxu1 %v774_v27 }
 0x1bf   : > { %2149 = vmatprep.subr.mxu1 %v2540_v9 }
 0x1c0   : > { %2150 = vmatpush3.msra.mxu1 %v773_v28 }
 0x1c1   : > { %2152 = vmatmul.mubr.msk.f32.vlgmr.msra.gmra.mxu1 %vm660_vm0, %v688_v24  ;;  %2165 = vmatprep.subr.mxu1 %v2540_v9 }
 0x1c2   : > { %2167 = vmatprep.mubr.msk.f32.mxu1 %vm2541_vm1, %v2540_v9 }
 0x279   : > { %v769_v30 = vpop.f32.mrf.mxu1  ;;  %v931_v31 = vpop.f32.mrf.mxu0 }
 0x27a   : > { %v770_v32 = vadd.f32 %v2052_v29, %v769_v30  ;;  %v2918_v40 = vadd.f32 %v2056_v39, %v931_v31 }
 0x27b   : > { %v2142_v33 = vpop.f32.mrf.mxu1  ;;  %v2164_v34 = vpop.f32.mrf.mxu0 }
 0x27c   : > { %1100 = vrot.lane.b32.xlu1 %v770_v32, %s2542_s23 }
 0x281   : > { %v850_v36 = vpop.f32.mrf.mxu1 }
 0x282   : > { %v851_v37 = vadd.f32 %v2054_v35, %v850_v36 }
 0x283   : > { %v2153_v38 = vpop.f32.mrf.mxu1 }
 0x284   : > { %1270 = vrot.lane.b32.xlu0 %v851_v37, %s2543_s27  ;;  %1102 = vrot.lane.b32.xlu1 %v851_v37, %s2542_s23 }
 0x285   : > { %2166 = vmatpush3.xpose.msk.msra.mxu1 %vm937_vm2, %v851_v37 }
 0x286   : > { %2170 = vmatprep.subr.mxu1 %v2540_v9 }
 0x288   : > { %2168 = vmatmul.mubr.msk.f32.vlgmr.msra.gmra.mxu1 %vm937_vm2, %v770_v32  ;;  %1268 = vrot.lane.b32.xlu1 %v770_v32, %s2543_s27 }
 0x289   : > { %2171 = vmatpush3.msra.mxu1 %v2918_v40  ;;  %2172 = vmatprep.mubr.msk.f32.mxu1 %vm2541_vm1, %v2540_v9 }
 0x28a   : > { %2180 = vmatprep.subr.mxu1 %v2540_v9 }
 0x28c   : > { %1437 = vrot.lane.b32.xlu1 %v851_v37, %s2544_s25 }
 0x290   : > { %1435 = vrot.lane.b32.xlu1 %v770_v32, %s2544_s25 }
 0x2ee   : > { %v1101_v41 = vpop.permute.xlu1 %1100 }
 0x2f6   : > { %v1103_v42 = vpop.permute.xlu1 %1102  ;;  %v1271_v43 = vpop.permute.xlu0 %1270 }
 0x2f7   : > { %2176 = vmatpush3.xpose.msk.msra.mxu0 %vm937_vm2, %v1103_v42 }
 0x2f8   : > { %2185 = vmatprep.subr.mxu0 %v2540_v9 }
 0x2fa   : > { %2178 = vmatmul.mubr.msk.f32.vlgmr.msra.gmra.mxu0 %vm937_vm2, %v1101_v41  ;;  %v1269_v44 = vpop.permute.xlu1 %1268 }
 0x2fb   : > { %2186 = vmatpush3.xpose.msk.msra.mxu0 %vm937_vm2, %v1271_v43  ;;  %2187 = vmatprep.mubr.msk.f32.mxu0 %vm2541_vm1, %v2540_v9  ;;  %v1622_v43 = vld [vmem:[#allocation7 + $0x18] sm:$0xff] }
 0x2fc   : > { %2195 = vmatprep.subr.mxu0 %v2540_v9 }
 0x2fe   : > { %2188 = vmatmul.mubr.msk.f32.vlgmr.msra.gmra.mxu0 %vm937_vm2, %v1269_v44  ;;  %v1438_v45 = vpop.permute.xlu1 %1437  ;;  %v1621_v44 = vld [vmem:[#allocation7 + $0x10] sm:$0xff] }
 0x2ff   : > { %2196 = vmatpush3.xpose.msk.msra.mxu0 %vm937_vm2, %v1438_v45  ;;  %2197 = vmatprep.mubr.msk.f32.mxu0 %vm2541_vm1, %v2540_v9  ;;  %v1620_v45 = vld [vmem:[#allocation7 + $0x8] sm:$0xff] }
 0x300   : > { %2205 = vmatprep.subr.mxu0 %v2540_v9 }
 0x302   : > { %v1436_v46 = vpop.permute.xlu1 %1435 }
 0x303   : > { %2198 = vmatmul.mubr.msk.f32.vlgmr.msra.gmra.mxu0 %vm937_vm2, %v1436_v46 }
 0x304   : > { %2213 = vmatprep.mubr.msk.f32.mxu0 %vm2541_vm1, %v2540_v9  ;;  %2206 = vmatpush3.msra.mxu0 %v1622_v43 }
 0x305   : > { %2207 = vmatprep.subr.mxu0 %v2540_v9 }
 0x306   : > { %2208 = vmatpush3.msra.mxu0 %v1621_v44 }
 0x307   : > { %2209 = vmatprep.subr.mxu0 %v2540_v9 }
 0x308   : > { %2210 = vmatpush3.msra.mxu0 %v1620_v45 }
 0x309   : > { %2211 = vmatprep.subr.mxu0 %v2540_v9 }
 0x348   : > { %v1010_v48 = vpop.f32.mrf.mxu1 }
 0x349   : > { %v1014_v49 = vmul.f32 0.35355338, %v1010_v48 }
 0x34a   : > { %v2169_v50 = vpop.f32.mrf.mxu1 }
 0x34b   : > { %v1015_v51 = vsel %vm936_vm3, -1e+09, %v1014_v49  ;;  %v1619_v50 = vld [vmem:[#allocation7] sm:$0xff] }
 0x34c   : > { %v1016_v52 = vsel %vm937_vm2, %v1015_v51, -inf  ;;  %2212 = vmatpush3.msra.mxu0 %v1619_v50 }
 0x34d   : > { %1017 = vmax.xlane.f32.xlu1 %v1016_v52  ;;  %2227 = vmatprep.subr.mxu0 %v2540_v9 }
 0x3ba   : > { %v1174_v53 = vpop.f32.mrf.mxu0 }
 0x3bb   : > { %v1178_v54 = vmul.f32 0.35355338, %v1174_v53 }
 0x3bc   : > { %v2179_v55 = vpop.f32.mrf.mxu0 }
 0x3bd   : > { %v1179_v56 = vsel %vm936_vm3, -1e+09, %v1178_v54 }
 0x3be   : > { %v1342_v57 = vpop.f32.mrf.mxu0  ;;  %v1180_v58 = vsel %vm937_vm2, %v1179_v56, -inf }
 0x3bf   : > { %v1346_v59 = vmul.f32 0.35355338, %v1342_v57  ;;  %1181 = vmax.xlane.f32.xlu0 %v1180_v58 }
 0x3c0   : > { %v2189_v60 = vpop.f32.mrf.mxu0 }
 0x3c1   : > { %v1347_v61 = vsel %vm936_vm3, -1e+09, %v1346_v59  ;;  %v2070_v59 = vld [vmem:[%s3090_s9] ss:$0 sm:$0xff] }
 0x3c2   : > { %v1348_v62 = vsel %vm937_vm2, %v1347_v61, -inf }
 0x3c3   : > { %v1509_v63 = vpop.f32.mrf.mxu0  ;;  %1349 = vmax.xlane.f32.xlu1 %v1348_v62 }
 0x3c4   : > { %v1513_v1 = vmul.f32 0.35355338, %v1509_v63 }
 0x3c5   : > { %v2199_v2 = vpop.f32.mrf.mxu0 }
 0x3c6   : > { %v1514_v3 = vsel %vm936_vm3, -1e+09, %v1513_v1 }
 0x3c7   : > { %v1515_v4 = vsel %vm937_vm2, %v1514_v3, -inf }
 0x3c8   : > { %1516 = vmax.xlane.f32.xlu1 %v1515_v4 }
 0x3d6   : > { %v1018_v5 = vpop.xlane.xlu1 %1017 }
 0x3d7   : > { %v1019_v6 = vsub.f32 %v1015_v51, %v1018_v5 }
 0x3d9   : > { %v1020_v7 = vmul.f32 1.442695, %v1019_v6 }
 0x3db   : > { %2330 = vpow2.f32 %v1020_v7  ;;  %v1736_v7 = vld [vmem:[#allocation8 + $0x18] sm:$0xff] }
 0x3e8   : > { %v2331_v8 = vpop.eup %2330 }
 0x3e9   : > { %v1022_v10 = vsel %vm937_vm2, %v2331_v8, 0.0 }
 0x3ea   : > { %1023 = vadd.xlane.f32.xlu0 %v1022_v10  ;;  %v1734_v10 = vld [vmem:[#allocation8 + $0x8] sm:$0xff] }
 0x448   : > { %v1182_v11 = vpop.xlane.xlu0 %1181 }
 0x449   : > { %v1183_v12 = vsub.f32 %v1179_v56, %v1182_v11  ;;  %v1825_v11 = vld [vmem:[%s3151_s15 + $0x38] sm:$0xff] }
 0x44b   : > { %v1184_v13 = vmul.f32 1.442695, %v1183_v12  ;;  %v1824_v12 = vld [vmem:[%s3151_s15 + $0x30] sm:$0xff] }
 0x44c   : > { %v1350_v14 = vpop.xlane.xlu1 %1349 }
 0x44d   : > { %2332 = vpow2.f32 %v1184_v13  ;;  %v1351_v15 = vsub.f32 %v1347_v61, %v1350_v14  ;;  %v1823_v13 = vld [vmem:[%s3151_s15 + $0x28] sm:$0xff]  ;;  %v1822_v14 = vld [vmem:[%s3151_s15 + $0x20] sm:$0xff] }
 0x44f   : > { %v1352_v16 = vmul.f32 1.442695, %v1351_v15  ;;  %v1821_v15 = vld [vmem:[%s3151_s15 + $0x18] sm:$0xff] }
 0x451   : > { %2334 = vpow2.f32 %v1352_v16  ;;  %v1517_v22 = vpop.xlane.xlu1 %1516 }
 0x452   : > { %v1518_v23 = vsub.f32 %v1514_v3, %v1517_v22  ;;  %v2073_v22 = vld [vmem:[%s3153_s1] ss:$0 sm:$0xff]  ;;  %s2079_s1 = sshll.u32 %s2665_s0, 7  ;;  %s2548_s0 = smov [#allocation10]  }
 0x454   : > { %v1519_v24 = vmul.f32 1.442695, %v1518_v23 }
 0x45a   : > { %v2333_v17 = vpop.eup %2332 }
 0x45b   : > { %v1186_v18 = vsel %vm937_vm2, %v2333_v17, 0.0 }
 0x45c   : > { %1187 = vadd.xlane.f32.xlu1 %v1186_v18 }
 0x45e   : > { %v2335_v19 = vpop.eup %2334 }
 0x45f   : > { %v1354_v20 = vsel %vm937_vm2, %v2335_v19, 0.0 }
 0x460   : > { %1355 = vadd.xlane.f32.xlu0 %v1354_v20 }
 0x46d   : > { %1359 = vrot.lane.b32.xlu1 %v2918_v40, %s2543_s27  ;;  %s1921_s27 = scalar_lea.hbm %s3157_s14, %s2079_s1 }
 0x473   : > { %v1024_v21 = vpop.xlane.xlu0 %1023 }
 0x474   : > { %2336 = vrcp.f32 %v1024_v21 }
 0x475   : > { %2338 = vpow2.f32 %v1519_v24 }
 0x476   : > { %1192 = vrot.lane.b32.xlu0 %v2918_v40, %s2542_s23  ;;  %s656_s23 = scalar_lea.vmem [#allocation10], %s2807_s12  ;;  %s2460_s12 = sshll.u32 %s2548_s0, 4  ;;  %s2461_s12 = int_to_ptr.vmem [resolvable:$false] %s2460_s12 }
 0x477   : > { %s1923_s13 = sshll.u32 %s656_s23, 4  ;;  %s1924_s13 = int_to_ptr.vmem [resolvable:$true] %s1923_s13 }
 0x478   : > { %p2463_p5 = scmp.lt.s32.totalorder %s1924_s13, %s2461_s12 }
 0x481   : > { %v2337_v25 = vpop.eup %2336 }
 0x482   : > { %v1026_v26 = vmul.f32 %v2337_v25, %v2331_v8  ;;  %v2339_v27 = vpop.eup %2338  ;;  %v1735_v8 = vld [vmem:[#allocation8 + $0x10] sm:$0xff] }
 0x483   : > { %v1521_v28 = vsel %vm937_vm2, %v2339_v27, 0.0  ;;  %v1820_v25 = vld [vmem:[%s3151_s15 + $0x10] sm:$0xff] }
 0x484   : > { %2173 = vmatmul.mubr.msk.f32.vlgmr.msra.gmra.mxu1 %vm937_vm2, %v1026_v26  ;;  %v1819_v26 = vld [vmem:[%s3151_s15 + $0x8] sm:$0xff] }
 0x485   : > { %2182 = vmatprep.mubr.msk.f32.mxu1 %vm2541_vm1, %v2540_v9 }
 0x491   : > { %1522 = vadd.xlane.f32.xlu1 %v1521_v28 }
 0x4a2   : > { %1526 = vrot.lane.b32.xlu1 %v2918_v40, %s2544_s25  ;;  %s1910_s25 = scalar_lea.sflag [#allocation4], %s2804_s26 }
 0x4e5   : > { %v1188_v29 = vpop.xlane.xlu1 %1187 }
 0x4e6   : > { %2340 = vrcp.f32 %v1188_v29 }
 0x4e9   : > { %v1356_v30 = vpop.xlane.xlu0 %1355  ;;  %v1360_v34 = vpop.permute.xlu1 %1359 }
 0x4ea   : > { %2342 = vrcp.f32 %v1356_v30 }
 0x4ed   : > { %v1193_v31 = vpop.permute.xlu0 %1192 }
 0x4ee   : > { %2181 = vmatpush3.msra.mxu1 %v1193_v31 }
 0x4ef   : > { %2190 = vmatprep.subr.mxu1 %v2540_v9 }
 0x4f3   : > { %v2341_v32 = vpop.eup %2340 }
 0x4f4   : > { %v1190_v33 = vmul.f32 %v2341_v32, %v2333_v17 }
 0x4f6   : > { %2183 = vmatmul.mubr.msk.f32.vlgmr.msra.gmra.mxu1 %vm937_vm2, %v1190_v33  ;;  %v2076_v33 = vld [vmem:[%s3156_s18] ss:$0 sm:$0xff] }
 0x4f7   : > { %v2343_v35 = vpop.eup %2342  ;;  %2191 = vmatpush3.msra.mxu1 %v1360_v34  ;;  %2192 = vmatprep.mubr.msk.f32.mxu1 %vm2541_vm1, %v2540_v9 }
 0x4f8   : > { %v1358_v36 = vmul.f32 %v2343_v35, %v2335_v19  ;;  %2200 = vmatprep.subr.mxu1 %v2540_v9  ;;  %v2072_v19 = vld [vmem:[%s3152_s29] ss:$0 sm:$0xff] }
 0x4fa   : > { %2193 = vmatmul.mubr.msk.f32.vlgmr.msra.gmra.mxu1 %vm937_vm2, %v1358_v36 }
 0x4fb   : > { %2202 = vmatprep.mubr.msk.f32.mxu1 %vm2541_vm1, %v2540_v9 }
 0x51a   : > { %v1523_v37 = vpop.xlane.xlu1 %1522 }
 0x51b   : > { %2344 = vrcp.f32 %v1523_v37 }
 0x51e   : > { %v1527_v38 = vpop.permute.xlu1 %1526 }
 0x51f   : > { %2201 = vmatpush3.msra.mxu1 %v1527_v38 }
 0x520   : > { %2216 = vmatprep.subr.mxu1 %v2540_v9 }
 0x528   : > { %v2345_v39 = vpop.eup %2344 }
 0x529   : > { %v1525_v40 = vmul.f32 %v2345_v39, %v2339_v27  ;;  %v1818_v27 = vld [vmem:[%s3151_s15] sm:$0xff] }
 0x52b   : > { %2203 = vmatmul.mubr.msk.f32.vlgmr.msra.gmra.mxu1 %vm937_vm2, %v1525_v40 }
 0x52c   : > { %2224 = vmatprep.mubr.msk.f32.mxu1 %vm2541_vm1, %v2540_v9  ;;  %2217 = vmatpush3.msra.mxu1 %v1736_v7 }
 0x52d   : > { %2218 = vmatprep.subr.mxu1 %v2540_v9 }
 0x52e   : > { %2219 = vmatpush3.msra.mxu1 %v1735_v8 }
 0x52f   : > { %2220 = vmatprep.subr.mxu1 %v2540_v9 }
 0x530   : > { %2221 = vmatpush3.msra.mxu1 %v1734_v10 }
 0x531   : > { %2222 = vmatprep.subr.mxu1 %v2540_v9 }
 0x544   : > { %v1096_v41 = vpop.f32.mrf.mxu1 }
 0x546   : > { %v2174_v42 = vpop.f32.mrf.mxu1 }
 0x5b6   : > { %v1264_v46 = vpop.f32.mrf.mxu1 }
 0x5b7   : > { %1603 = vrot.lane.b32.xlu0 %v1264_v46, %s2545_s20  ;;  %s2456_s20 = scalar_lea.vmem %s1924_s13, 128 }
 0x5b8   : > { %v2184_v47 = vpop.f32.mrf.mxu1  ;;  %p2457_p12 = scmp.ne.s32.totalorder %s1924_s13, %s2456_s20 }
 0x5ba   : > { %v1431_v48 = vpop.f32.mrf.mxu1 }
 0x5bb   : > { %1607 = vrot.lane.b32.xlu1 %v1431_v48, %s2546_s22  ;;  %s3154_s22 = sld [smem:[#allocation29_spill]] }
 0x5bc   : > { %v2194_v49 = vpop.f32.mrf.mxu1 }
 0x5c1   : > { %v2074_v28 = vld [vmem:[%s3154_s22] ss:$0 sm:$0xff]  ;;  %s2462_s22 = scalar_lea.vmem %s2461_s12, 256 }
 0x5c2   : > { %p2464_p1 = scmp.lt.s32.totalorder %s2462_s22, %s2456_s20 }
 0x5c4   : > { %p2465_p3 = por %p2464_p1, %p2463_p5 }
 0x5eb   : > { %v1598_v51 = vpop.f32.mrf.mxu1 }
 0x5ec   : > { %1611 = vrot.lane.b32.xlu0 %v1598_v51, %s2547_s2  ;;  %s3155_s2 = sld [smem:[#allocation20_spill]] }
 0x5ed   : > { %v2204_v52 = vpop.f32.mrf.mxu1 }
 0x5f2   : > { %p3158_p7 = scmp.ne.s32.totalorder %s3155_s2, 0 }
 0x5f4   : > { %p2458_p9 = pnand %p2457_p12, %p3158_p7 }
 0x5f6   : > { %p2459_p13 = pneg %p2458_p9 }
 0x5f8   : > { %p2466_p4 = pnand %p2465_p3, %p2459_p13 }
 0x629   : > { %v1604_v53 = vpop.permute.xlu0 %1603 }
 0x62a   : > { %v1614_v55 = vsel %vm937_vm2, %v1096_v41, %v1604_v53 }
 0x62d   : > { %v1608_v54 = vpop.permute.xlu1 %1607 }
 0x62e   : > { %v1616_v56 = vsel %vm1615_vm4, %v1614_v55, %v1608_v54 }
 0x65e   : > { %v1612_v57 = vpop.permute.xlu0 %1611 }
 0x65f   : > { %v1618_v58 = vsel %vm1617_vm5, %v1616_v56, %v1612_v57 }
 0x660   : > { %2214 = vmatmul.mubr.msk.f32.vlgmr.msra.gmra.mxu0 %vm660_vm0, %v1618_v58 }
 0x661   : > { %2243 = vmatprep.mubr.msk.f32.mxu0 %vm2541_vm1, %v2540_v9  ;;  %2228 = vmatpush3.msra.mxu0 %v1825_v11 }
 0x662   : > { %2229 = vmatprep.subr.mxu0 %v2540_v9 }
 0x663   : > { %2230 = vmatpush3.msra.mxu0 %v1824_v12 }
 0x664   : > { %2231 = vmatprep.subr.mxu0 %v2540_v9 }
 0x665   : > { %2232 = vmatpush3.msra.mxu0 %v1823_v13 }
 0x666   : > { %2233 = vmatprep.subr.mxu0 %v2540_v9 }
 0x667   : > { %2234 = vmatpush3.msra.mxu0 %v1822_v14 }
 0x668   : > { %2235 = vmatprep.subr.mxu0 %v2540_v9 }
 0x669   : > { %2236 = vmatpush3.msra.mxu0 %v1821_v15 }
 0x66a   : > { %2237 = vmatprep.subr.mxu0 %v2540_v9 }
 0x66b   : > { %2238 = vmatpush3.msra.mxu0 %v1820_v25 }
 0x66c   : > { %2239 = vmatprep.subr.mxu0 %v2540_v9 }
 0x66d   : > { %2240 = vmatpush3.msra.mxu0 %v1819_v26 }
 0x66e   : > { %2241 = vmatprep.subr.mxu0 %v2540_v9 }
 0x66f   : > { %2242 = vmatpush3.msra.mxu0 %v1818_v27 }
 0x720   : > { %v1699_v60 = vpop.f32.mrf.mxu0 }
 0x721   : > { %v1700_v61 = vadd.f32 %v2070_v59, %v1699_v60 }
 0x722   : > { %v2215_v62 = vpop.f32.mrf.mxu0 }
 0x723   : > { %v2990_v63 = vadd.f32 %v1700_v61, %v2829_v0  ;;  %v1733_v0 = vld [vmem:[#allocation8] sm:$0xff] }
 0x724   : > { %2223 = vmatpush3.msra.mxu1 %v1733_v0 }
 0x725   : > { %v1706_v1 = vsel %vm660_vm0, %v2990_v63, 0.0 }
 0x726   : > { %1707 = vadd.xlane.f32.xlu1 %v1706_v1 }
 0x7af   : > { %v1708_v2 = vpop.xlane.xlu1 %1707 }
 0x7b0   : > { %v1709_v3 = vmul.f32 0.03125, %v1708_v2 }
 0x7b2   : > { %v1710_v4 = vsub.f32 %v2990_v63, %v1709_v3 }
 0x7b4   : > { %v1711_v5 = vmul.f32 %v1710_v4, %v1710_v4  ;;  %v1722_v20 = vmul.f32 %v2072_v19, %v1710_v4 }
 0x7b6   : > { %v1712_v6 = vsel %vm660_vm0, %v1711_v5, 0.0 }
 0x7b7   : > { %1713 = vadd.xlane.f32.xlu0 %v1712_v6 }
 0x840   : > { %v1714_v16 = vpop.xlane.xlu0 %1713 }
 0x841   : > { %v1715_v17 = vmul.f32 0.032258064, %v1714_v16 }
 0x843   : > { %v1723_v18 = vadd.f32 1e-06, %v1715_v17 }
 0x845   : > { %2346 = vrsqrt.f32 %v1723_v18 }
 0x852   : > { %v2347_v21 = vpop.eup %2346 }
 0x853   : > { %v1725_v23 = vmul.f32 %v2347_v21, %v1722_v20 }
 0x855   : > { %v1732_v24 = vadd.f32 %v2073_v22, %v1725_v23 }
 0x857   : > { %2225 = vmatmul.mubr.msk.f32.vlgmr.msra.gmra.mxu1 %vm660_vm0, %v1732_v24 }
 0x917   : > { %v1813_v29 = vpop.f32.mrf.mxu1 }
 0x918   : > { %v1814_v30 = vadd.f32 %v2074_v28, %v1813_v29 }
 0x919   : > { %v2226_v31 = vpop.f32.mrf.mxu1 }
 0x91a   : > { %v1817_v32 = vmax.f32 %v1814_v30, 0.0 }
 0x91c   : > { %2244 = vmatmul.mubr.msk.f32.vlgmr.msra.gmra.mxu0 %vm1833_vm6, %v1817_v32 }
 0x9dc   : > { %v1903_v34 = vpop.f32.mrf.mxu0 }
 0x9dd   : > { %v1904_v9 = vadd.f32 %v2076_v33, %v1903_v34 }
 0x9de   : > { %v2245_v35 = vpop.f32.mrf.mxu0 }
 0x9df   : > { %v1907_v36 = vadd.f32 %v1904_v9, %v2990_v63 }
 0x9e1   : > { %1908 = vst.msk [vmem:[%s656_s23] sm:$0xff] %vm660_vm0, %v1907_v36 }
 0x9e2   : > { %2469 = shalt.err (!%p2466_p4)
}
 0x9e3   : > { %s2470_s29 = scalar_lea.hbm %s1921_s27, 128  ;;  %s2474_s18 = scalar_lea.hbm %s3157_s14, 256 }
 0x9e4   : > { %p2471_p10 = scmp.ne.s32.totalorder %s1921_s27, %s2470_s29  ;;  %p2475_p11 = scmp.lt.s32.totalorder %s1921_s27, %s3157_s14 }
 0x9e5   : > { %p2476_p2 = scmp.lt.s32.totalorder %s2474_s18, %s2470_s29 }
 0x9e6   : > { %p2472_p0 = pnand %p2471_p10, %p3158_p7 }
 0x9e7   : > { %p2477_p6 = por %p2476_p2, %p2475_p11 }
 0x9e8   : > { %p2473_p8 = pneg %p2472_p0 }
 0x9ea   : > { %p2478_p12 = pnand %p2477_p6, %p2473_p8 }
 0x9ec   : > { %2481 = shalt.err (!%p2478_p12)
}
 0x9ed   : > { %2258 = dma.vmem_to_hbm [thread:$0]  (%p3158_p7), %s1924_s13, 128, %s1921_s27, %s1910_s25  }
 0x9ee PF: > { %s3159_s24 = sld [smem:[#allocation16_spill]]  ;;  %p3162_p13 = scmp.ge.s32.totalorder %s2532_s30, 2 }
 0x9ef   : > { %s3160_s19 = sld [smem:[#allocation18_spill]] }
 0x9f4   : > { %s1935_s20 = sand.u32 1, %s3159_s24  }
 0x9f5   : > { %p3161_p9 = scmp.ne.s32.totalorder %s3160_s19, 0  ;;  %s1936_s0 = scalar_lea.sflag [#allocation4], %s1935_s20 }
 0x9f7   : > { %p2275_p5 = pnand %p3162_p13, %p3161_p9 }
 0x9f9   : > { %p2276_p1 = pneg %p2275_p5 }
 0x9fb   : > { %2515 = dma.done.wait (%p2276_p1), %s1936_s0, 128  }
 0x9fc   : > { %2517 = vsyncadd (%p2276_p1), %s1936_s0, 4294967168  ;;  %s3163_s30 = sld [smem:[#allocation19_spill]]  ;;  %s3166_s27 = smov %s2524_s28 }
 0x9fd   : > { %s3164_s12 = sld [smem:[#allocation17_spill]] }
 0x9fe   : > { %s3165_s29 = sld [smem:[#allocation21_spill]] }
 0xa02   : > { %p35_p3 = scmp.ge.s32.totalorder %s3163_s30, 4  }
 0xa03   : > { %s3167_s28 = smov %s3164_s12 }
 0xa04   :  { %37 = sbr.rel (!%p35_p3) target bundleno = 20 (0x14), region = 158 }
 0xa09   :  { %1941 = vsyncpa [#allocation3], 1 }
 0xa0a   :  { %1943 = vsyncpa [#allocation3 + $0x1], 1 }
 0xa0b   :  { %1944 = vsyncpa [#allocation6], 1 }
 0xa0c   :  { %1946 = vsyncpa [#allocation6 + $0x1], 1 }
 0xa0d   :  { %1947 = vsyncpa [#allocation9], 1 }
 0xa0e   :  { %1948 = vsyncpa [#allocation4], 1 }
 0xa0f   :  { %1950 = vsyncpa [#allocation4 + $0x1], 1 }

</bundles_post_ra>
